<compile_context>
chip_gen: v7x
topology: tpu7x:2x2x1
jax: 0.10.0
libtpu: 0.0.40
codegen_flags: <defaults>
</compile_context>

<pallas_src>
import jax
import jax.numpy as jnp
from jax.experimental import pallas as pl
from jax.experimental.pallas import tpu as pltpu

_IN_FEATURES = 28 * 28      # 784
_NUM_CLASSES = 10
_PADDED_CLASSES = 128       # lane-dense logit width


def _netlp_kernel(x_ref, w_ref, b_ref, o_ref):
    # Linear: (TM, 784) @ (784, 128) + (1, 128)   (cols >= 10 are zero-padded)
    z = jnp.dot(x_ref[...], w_ref[...], preferred_element_type=jnp.float32)
    z = z + b_ref[...]                       # broadcast bias over batch
    # ReLU
    z = jnp.maximum(z, 0.0)
    # Mask the padded logit columns to -inf so they contribute nothing to
    # the log-sum-exp (ReLU(0)=0 would otherwise leak exp(0)=1 terms).
    col = jax.lax.broadcasted_iota(jnp.int32, z.shape, 1)
    z = jnp.where(col < _NUM_CLASSES, z, -jnp.inf)
    # log_softmax over dim=1 (numerically stable; real cols are >= 0 so the
    # row max is always finite).
    m = jnp.max(z, axis=-1, keepdims=True)
    shifted = z - m
    lse = jnp.log(jnp.sum(jnp.exp(shifted), axis=-1, keepdims=True))
    o_ref[...] = (shifted - lse).astype(o_ref.dtype)


def netlp_forward(x, weight, bias, *, tm=1024):
    """x: (B, 1, 28, 28) or (B, 784) float32; weight: (10, 784); bias: (10,)."""
    x2d = x.reshape(-1, _IN_FEATURES).astype(jnp.float32)
    B = x2d.shape[0]

    # Batch tile: multiple of 8 (sublane constraint), never over-pad tiny
    # batches, default 1024 rows (~6.4 MiB double-buffered -> fits the
    # 16/32 MiB scoped-VMEM defaults on v5e/v6e/v7x with headroom).
    tm = max(8, min(tm, pl.cdiv(B, 8) * 8))
    b_pad_rows = pl.cdiv(B, tm) * tm
    if b_pad_rows != B:
        x2d = jnp.pad(x2d, ((0, b_pad_rows - B), (0, 0)))

    # Lane-pad weight/bias to 128 output columns (zeros in padded columns).
    w_t = weight.T.astype(jnp.float32)                      # (784, 10)
    w_pad = jnp.zeros((_IN_FEATURES, _PADDED_CLASSES), jnp.float32)
    w_pad = w_pad.at[:, :_NUM_CLASSES].set(w_t)
    b_pad = jnp.zeros((1, _PADDED_CLASSES), jnp.float32)
    b_pad = b_pad.at[:, :_NUM_CLASSES].set(bias.astype(jnp.float32).reshape(1, _NUM_CLASSES))

    grid = (b_pad_rows // tm,)

    cost = pl.CostEstimate(
        flops=2 * B * _IN_FEATURES * _NUM_CLASSES,
        transcendentals=B * _NUM_CLASSES,
        bytes_accessed=(B * _IN_FEATURES * 4
                        + B * _NUM_CLASSES * 4
                        + _IN_FEATURES * _NUM_CLASSES * 4),
    )

    out_padded = pl.pallas_call(
        _netlp_kernel,
        out_shape=jax.ShapeDtypeStruct((b_pad_rows, _PADDED_CLASSES), jnp.float32),
        grid_spec=pl.GridSpec(
            grid=grid,
            in_specs=[
                # x: one batch tile per grid step (pipelined/double-buffered).
                pl.BlockSpec((tm, _IN_FEATURES), lambda i: (i, 0)),
                # weight/bias: constant block index -> stays resident in VMEM.
                pl.BlockSpec((_IN_FEATURES, _PADDED_CLASSES), lambda i: (0, 0)),
                pl.BlockSpec((1, _PADDED_CLASSES), lambda i: (0, 0)),
            ],
            out_specs=pl.BlockSpec((tm, _PADDED_CLASSES), lambda i: (i, 0)),
        ),
        compiler_params=pltpu.CompilerParams(
            # Batch tiles are independent -> shard across v7x's 2 TensorCores.
            dimension_semantics=("parallel",),
        ),
        cost_estimate=cost,
    )(x2d, w_pad, b_pad)

    # Slice off the batch padding and the lane-padded logit columns.
    return out_padded[:B, :_NUM_CLASSES]


if __name__ == "__main__":
    key = jax.random.PRNGKey(0)
    kx, kw, kb = jax.random.split(key, 3)

    # Deterministic parameters matching nn.Linear(784, 10) shapes:
    # weight (10, 784), bias (10,); uniform(-1/sqrt(784), 1/sqrt(784)).
    bound = 1.0 / jnp.sqrt(784.0)
    weight = jax.random.uniform(kw, (_NUM_CLASSES, _IN_FEATURES), jnp.float32, -bound, bound)
    bias = jax.random.uniform(kb, (_NUM_CLASSES,), jnp.float32, -bound, bound)

    def ref_fn(xin):
        x2d = xin.reshape(-1, _IN_FEATURES)
        r = jax.nn.relu(x2d @ weight.T + bias)
        return jax.nn.log_softmax(r, axis=1)

    # Case 1: small MNIST-shaped batch, NCHW as PyTorch would feed it.
    B = 8
    x = jax.random.normal(kx, (B, 1, 28, 28), dtype=jnp.float32)
    out = netlp_forward(x, weight, bias)
    jax.block_until_ready(out)
    assert out.shape == (B, _NUM_CLASSES)
    assert jnp.allclose(out, ref_fn(x), atol=1e-5, rtol=1e-5)

    # Case 2: batch not divisible by the tile, multi-step grid (tm=8 -> 3 tiles).
    B2 = 20
    x2 = jax.random.normal(kx, (B2, 1, 28, 28), dtype=jnp.float32)
    out2 = netlp_forward(x2, weight, bias, tm=8)
    jax.block_until_ready(out2)
    assert out2.shape == (B2, _NUM_CLASSES)
    assert jnp.allclose(out2, ref_fn(x2), atol=1e-5, rtol=1e-5)

    print("KERNEL_OK")
</pallas_src>

<mosaic_0001>
module attributes {stable_mosaic.version = 11 : i64} {
  func.func @_netlp_kernel(%arg0: i32, %arg1: memref<8x784xf32, #tpu.memory_space<vmem>>, %arg2: memref<784x128xf32, #tpu.memory_space<vmem>>, %arg3: memref<1x128xf32, #tpu.memory_space<vmem>>, %arg4: memref<8x128xf32, #tpu.memory_space<vmem>>) attributes {dimension_semantics = [#tpu.dimension_semantics<parallel>], iteration_bounds = array<i64: 1>, scalar_prefetch = 0 : i64, scratch_operands = 0 : i64, tpu.core_type = #tpu.core_type<tc>, window_params = [{transform_indices = @transform_0, window_bounds = array<i64: 8, 784>}, {pipeline_mode = #tpu.pipeline_mode<synchronous>, transform_indices = @transform_1, window_bounds = array<i64: 784, 128>}, {pipeline_mode = #tpu.pipeline_mode<synchronous>, transform_indices = @transform_2, window_bounds = array<i64: 1, 128>}, {transform_indices = @transform_3, window_bounds = array<i64: 8, 128>}]} {
    %c0 = arith.constant 0 : index
    %c0_0 = arith.constant 0 : index
    %0 = vector.load %arg1[%c0, %c0_0] : memref<8x784xf32, #tpu.memory_space<vmem>>, vector<8x784xf32>
    %c0_1 = arith.constant 0 : index
    %c0_2 = arith.constant 0 : index
    %1 = vector.load %arg2[%c0_1, %c0_2] : memref<784x128xf32, #tpu.memory_space<vmem>>, vector<784x128xf32>
    %cst = arith.constant dense<0.000000e+00> : vector<8x128xf32>
    %2 = tpu.matmul %0, %1, %cst {dimension_numbers = #tpu.dot_dimension_numbers<[1], [0], [0], [1], [0, 0, 1, 1], [], []>} : vector<8x784xf32>, vector<784x128xf32>, vector<8x128xf32> -> vector<8x128xf32>
    %c0_3 = arith.constant 0 : index
    %c0_4 = arith.constant 0 : index
    %3 = vector.load %arg3[%c0_3, %c0_4] : memref<1x128xf32, #tpu.memory_space<vmem>>, vector<1x128xf32>
    %4 = vector.broadcast %3 : vector<1x128xf32> to vector<8x128xf32>
    %5 = arith.addf %2, %4 : vector<8x128xf32>
    %cst_5 = arith.constant 0.000000e+00 : f32
    %6 = vector.broadcast %cst_5 : f32 to vector<8x128xf32>
    %7 = arith.maximumf %5, %6 : vector<8x128xf32>
    %8 = tpu.iota {dimensions = array<i32: 1>} : vector<8x128xi32>
    %c10_i32 = arith.constant 10 : i32
    %9 = vector.broadcast %c10_i32 : i32 to vector<8x128xi32>
    %10 = arith.cmpi slt, %8, %9 : vector<8x128xi32>
    %cst_6 = arith.constant 0xFF800000 : f32
    %11 = vector.broadcast %cst_6 : f32 to vector<8x128xf32>
    %12 = arith.select %10, %7, %11 : vector<8x128xi1>, vector<8x128xf32>
    %cst_7 = arith.constant dense<0xFF800000> : vector<8xf32>
    %13 = vector.multi_reduction <maximumf>, %12, %cst_7 [1] : vector<8x128xf32> to vector<8xf32>
    %14 = vector.shape_cast %13 : vector<8xf32> to vector<8x1xf32>
    %15 = vector.broadcast %14 : vector<8x1xf32> to vector<8x128xf32>
    %16 = arith.subf %12, %15 : vector<8x128xf32>
    %17 = math.exp %16 : vector<8x128xf32>
    %cst_8 = arith.constant dense<0.000000e+00> : vector<8xf32>
    %18 = vector.multi_reduction <add>, %17, %cst_8 [1] : vector<8x128xf32> to vector<8xf32>
    %19 = vector.shape_cast %18 : vector<8xf32> to vector<8x1xf32>
    %20 = math.log %19 : vector<8x1xf32>
    %21 = vector.broadcast %20 : vector<8x1xf32> to vector<8x128xf32>
    %22 = arith.subf %16, %21 : vector<8x128xf32>
    %c0_9 = arith.constant 0 : index
    %c0_10 = arith.constant 0 : index
    %23 = vector.load %arg4[%c0_9, %c0_10] : memref<8x128xf32, #tpu.memory_space<vmem>>, vector<8x128xf32>
    tpu.vector_store %arg4[%c0_9, %c0_10], %22 {strides = array<i32>} : memref<8x128xf32, #tpu.memory_space<vmem>>, vector<8x128xf32>,
    return
  }
  func.func @transform_0(%arg0: i32) -> (i32, i32) {
    %c0_i32 = arith.constant 0 : i32
    %c0_i32_0 = arith.constant 0 : i32
    return %arg0, %c0_i32 : i32, i32
  }
  func.func @transform_1(%arg0: i32) -> (i32, i32) {
    %c0_i32 = arith.constant 0 : i32
    %c0_i32_0 = arith.constant 0 : i32
    %c0_i32_1 = arith.constant 0 : i32
    return %c0_i32, %c0_i32_0 : i32, i32
  }
  func.func @transform_2(%arg0: i32) -> (i32, i32) {
    %c0_i32 = arith.constant 0 : i32
    %c0_i32_0 = arith.constant 0 : i32
    %c0_i32_1 = arith.constant 0 : i32
    return %c0_i32, %c0_i32_0 : i32, i32
  }
  func.func @transform_3(%arg0: i32) -> (i32, i32) {
    %c0_i32 = arith.constant 0 : i32
    %c0_i32_0 = arith.constant 0 : i32
    return %arg0, %c0_i32 : i32, i32
  }
}

</mosaic_0001>

<bundles_post_ra>
// kernel: tpu_custom_call.1
= control target key start
LH: loop header
LB: loop body
LE: loop exit
PB: predicated region body
PF: predicated region fallthrough
CT: control target
= control target key end

     0   :  { %8 = vsyncpa [#allocation3], 0  ;;  %s843_s0 = inlined_call_operand.hbm [shape: f32[8,784], index: 0, kind: input, shape index: {}]   ;;  %s844_s1 = inlined_call_operand.hbm [shape: f32[784,128], index: 1, kind: input, shape index: {}]   ;;  %s845_s2 = inlined_call_operand.vmem [shape: f32[1,128], index: 2, kind: input, shape index: {}]   ;;  %s846_s3 = inlined_call_operand.hbm [shape: f32[8,128], index: 3, kind: output, shape index: {}]  }
   0x1   :  { %9 = vsyncpa [#allocation6], 0 }
   0x2   :  { %10 = vsyncpa [#allocation4], 0  ;;  %s769_s12 = smov [#allocation2]   ;;  %s770_s14 = smov [#allocation5]  }
   0x3   :  { %s17_s13 = sshll.u32 %s769_s12, 4  ;;  %s26_s15 = sshll.u32 %s770_s14, 4  ;;  %s18_s13 = int_to_ptr.vmem [resolvable:$true] %s17_s13  ;;  %s797_s15 = int_to_ptr.vmem [resolvable:$true] %s26_s15 }
   0x4   :  { %s697_s18 = scalar_lea.hbm %s843_s0, 896 }
   0x5   :  { %p698_p0 = scmp.ne.s32.totalorder %s843_s0, %s697_s18  ;;  %p701_p1 = scmp.lt.u32.totalorder %s697_s18, %s843_s0 }
   0x7   :  { %p703_p2 = pnand %p701_p1, %p698_p0 }
   0x9   :  { %706 = shalt.err (!%p703_p2)
}
   0xa   :  { %s707_s23 = scalar_lea.vmem %s18_s13, 896  ;;  %p712_p4 = scmp.lt.s32.totalorder %s18_s13, %s18_s13 }
   0xb   :  { %p708_p3 = scmp.ne.s32.totalorder %s18_s13, %s707_s23  ;;  %p713_p5 = scmp.lt.s32.totalorder %s707_s23, %s707_s23 }
   0xd   :  { %p714_p6 = por %p713_p5, %p712_p4 }
   0xf   :  { %p715_p7 = pnand %p714_p6, %p708_p3 }
  0x11   :  { %718 = shalt.err (!%p715_p7)
}
  0x12   :  { %20 = dma.hbm_to_vmem [thread:$0]  %s843_s0, 896, %s18_s13, [#allocation3]  }
  0x13   :  { %s719_s28 = scalar_lea.hbm %s844_s1, 12544 }
  0x14   :  { %p720_p8 = scmp.ne.s32.totalorder %s844_s1, %s719_s28  ;;  %p723_p9 = scmp.lt.u32.totalorder %s719_s28, %s844_s1 }
  0x16   :  { %p725_p10 = pnand %p723_p9, %p720_p8 }
  0x18   :  { %728 = shalt.err (!%p725_p10)
}
  0x19   :  { %s729_s6 = scalar_lea.vmem %s797_s15, 12544  ;;  %p734_p12 = scmp.lt.s32.totalorder %s797_s15, %s797_s15 }
  0x1a   :  { %p730_p11 = scmp.ne.s32.totalorder %s797_s15, %s729_s6  ;;  %p735_p13 = scmp.lt.s32.totalorder %s729_s6, %s729_s6 }
  0x1c   :  { %p736_p0 = por %p735_p13, %p734_p12 }
  0x1e   :  { %p737_p1 = pnand %p736_p0, %p730_p11 }
  0x20   :  { %740 = shalt.err (!%p737_p1)
}
  0x21   :  { %s771_s0 = smov 128   ;;  %s772_s7 = smov 8  }
  0x22   :  { %32 = dma.hbm_to_vmem [thread:$0]  %s844_s1, 12544, %s797_s15, [#allocation6], %s771_s0, %s771_s0, %s772_s7  }
  0x23   :  { %763 = dma.done.wait [#allocation3], 896  }
  0x24   :  { %764 = vsyncadd [#allocation3], 4294966400 }
  0x25   :  { %765 = dma.done.wait [#allocation6], 12544  }
  0x26   :  { %766 = vsyncadd [#allocation6], 4294954752  ;;  %v64_v0 = vld [vmem:[#allocation5 + $0x80] sm:$0xff]  ;;  %v65_v1 = vld [vmem:[#allocation5 + $0x88] sm:$0xff]  ;;  %vm774_vm0 = vmmov 0   ;;  %vm153_vm1 = vcmask 130048  }
  0x27   :  { %v48_v2 = vld [vmem:[#allocation5] sm:$0xff]  ;;  %v586_v3 = vpack.c.bf16 %v65_v1, %v64_v0  ;;  %v49_v4 = vld [vmem:[#allocation5 + $0x8] sm:$0xff]  ;;  %v66_v11 = vld [vmem:[#allocation5 + $0x90] sm:$0xff] }
  0x28   :  { %v96_v5 = vld [vmem:[#allocation5 + $0x180] sm:$0xff]  ;;  %v97_v6 = vld [vmem:[#allocation5 + $0x188] sm:$0xff]  ;;  %v588_v7 = vpack.c.bf16 %v49_v4, %v48_v2  ;;  %v67_v13 = vld [vmem:[#allocation5 + $0x98] sm:$0xff] }
  0x29   :  { %v618_v8 = vpack.c.bf16 %v97_v6, %v96_v5  ;;  %v80_v9 = vld [vmem:[#allocation5 + $0x100] sm:$0xff]  ;;  %v81_v10 = vld [vmem:[#allocation5 + $0x108] sm:$0xff]  ;;  %587 = vmatprep.subr.bf16.mxu0 %v586_v3  ;;  %v50_v14 = vld [vmem:[#allocation5 + $0x10] sm:$0xff]  ;;  %v590_v16 = vpack.c.bf16 %v67_v13, %v66_v11 }
  0x2a   :  { %v620_v12 = vpack.c.bf16 %v81_v10, %v80_v9  ;;  %v51_v15 = vld [vmem:[#allocation5 + $0x18] sm:$0xff]  ;;  %589 = vmatpush3.bf16.msra.mxu0 %v588_v7  ;;  %v98_v18 = vld [vmem:[#allocation5 + $0x190] sm:$0xff]  ;;  %v68_v23 = vld [vmem:[#allocation5 + $0xa0] sm:$0xff] }
  0x2b   :  { %619 = vmatprep.subr.bf16.mxu1 %v618_v8  ;;  %v592_v17 = vpack.c.bf16 %v51_v15, %v50_v14  ;;  %v99_v19 = vld [vmem:[#allocation5 + $0x198] sm:$0xff]  ;;  %v82_v20 = vld [vmem:[#allocation5 + $0x110] sm:$0xff]  ;;  %v69_v24 = vld [vmem:[#allocation5 + $0xa8] sm:$0xff]  ;;  %591 = vmatprep.subr.bf16.mxu0 %v590_v16 }
  0x2c   :  { %621 = vmatpush3.bf16.msra.mxu1 %v620_v12  ;;  %v622_v21 = vpack.c.bf16 %v99_v19, %v98_v18  ;;  %v83_v22 = vld [vmem:[#allocation5 + $0x118] sm:$0xff]  ;;  %v594_v26 = vpack.c.bf16 %v69_v24, %v68_v23  ;;  %v52_v27 = vld [vmem:[#allocation5 + $0x20] sm:$0xff]  ;;  %v53_v28 = vld [vmem:[#allocation5 + $0x28] sm:$0xff] }
  0x2d   :  { %v624_v25 = vpack.c.bf16 %v83_v22, %v82_v20  ;;  %v100_v29 = vld [vmem:[#allocation5 + $0x1a0] sm:$0xff]  ;;  %v101_v30 = vld [vmem:[#allocation5 + $0x1a8] sm:$0xff]  ;;  %v596_v33 = vpack.c.bf16 %v53_v28, %v52_v27  ;;  %v70_v35 = vld [vmem:[#allocation5 + $0xb0] sm:$0xff] }
  0x2e   :  { %623 = vmatprep.subr.bf16.mxu1 %v622_v21  ;;  %v84_v31 = vld [vmem:[#allocation5 + $0x120] sm:$0xff]  ;;  %v85_v32 = vld [vmem:[#allocation5 + $0x128] sm:$0xff]  ;;  %593 = vmatpush3.bf16.msra.mxu0 %v592_v17  ;;  %v626_v34 = vpack.c.bf16 %v101_v30, %v100_v29  ;;  %v71_v36 = vld [vmem:[#allocation5 + $0xb8] sm:$0xff] }
  0x2f   :  { %v54_v37 = vld [vmem:[#allocation5 + $0x30] sm:$0xff]  ;;  %595 = vmatprep.subr.bf16.mxu0 %v594_v26  ;;  %v628_v38 = vpack.c.bf16 %v85_v32, %v84_v31  ;;  %v598_v39 = vpack.c.bf16 %v71_v36, %v70_v35  ;;  %v55_v40 = vld [vmem:[#allocation5 + $0x38] sm:$0xff]  ;;  %v72_v46 = vld [vmem:[#allocation5 + $0xc0] sm:$0xff] }
  0x30   :  { %625 = vmatpush3.bf16.msra.mxu1 %v624_v25  ;;  %v102_v41 = vld [vmem:[#allocation5 + $0x1b0] sm:$0xff]  ;;  %v103_v42 = vld [vmem:[#allocation5 + $0x1b8] sm:$0xff]  ;;  %v73_v47 = vld [vmem:[#allocation5 + $0xc8] sm:$0xff]  ;;  %v600_v48 = vpack.c.bf16 %v55_v40, %v54_v37 }
  0x31   :  { %627 = vmatprep.subr.bf16.mxu1 %v626_v34  ;;  %v630_v43 = vpack.c.bf16 %v103_v42, %v102_v41  ;;  %v86_v44 = vld [vmem:[#allocation5 + $0x130] sm:$0xff]  ;;  %v87_v45 = vld [vmem:[#allocation5 + $0x138] sm:$0xff]  ;;  %v104_v49 = vld [vmem:[#allocation5 + $0x1c0] sm:$0xff]  ;;  %v602_v52 = vpack.c.bf16 %v73_v47, %v72_v46 }
  0x32   :  { %597 = vmatpush3.bf16.msra.mxu0 %v596_v33  ;;  %v105_v50 = vld [vmem:[#allocation5 + $0x1c8] sm:$0xff]  ;;  %v632_v51 = vpack.c.bf16 %v87_v45, %v86_v44  ;;  %v56_v53 = vld [vmem:[#allocation5 + $0x40] sm:$0xff]  ;;  %v74_v58 = vld [vmem:[#allocation5 + $0xd0] sm:$0xff] }
  0x33   :  { %599 = vmatprep.subr.bf16.mxu0 %v598_v39  ;;  %v57_v54 = vld [vmem:[#allocation5 + $0x48] sm:$0xff]  ;;  %v88_v55 = vld [vmem:[#allocation5 + $0x140] sm:$0xff]  ;;  %v634_v56 = vpack.c.bf16 %v105_v50, %v104_v49  ;;  %v75_v59 = vld [vmem:[#allocation5 + $0xd8] sm:$0xff]  ;;  %v773_v50 = vmov 0.0|0.0  }
  0x34   :  { %629 = vmatpush3.bf16.msra.mxu1 %v628_v38  ;;  %v89_v57 = vld [vmem:[#allocation5 + $0x148] sm:$0xff]  ;;  %v106_v60 = vld [vmem:[#allocation5 + $0x1d0] sm:$0xff]  ;;  %v107_v61 = vld [vmem:[#allocation5 + $0x1d8] sm:$0xff]  ;;  %v604_v62 = vpack.c.bf16 %v57_v54, %v56_v53  ;;  %v606_v0 = vpack.c.bf16 %v75_v59, %v74_v58 }
  0x35   :  { %631 = vmatprep.subr.bf16.mxu1 %v630_v43  ;;  %v636_v63 = vpack.c.bf16 %v89_v57, %v88_v55  ;;  %v58_v1 = vld [vmem:[#allocation5 + $0x50] sm:$0xff]  ;;  %v59_v2 = vld [vmem:[#allocation5 + $0x58] sm:$0xff]  ;;  %v638_v4 = vpack.c.bf16 %v107_v61, %v106_v60  ;;  %v76_v6 = vld [vmem:[#allocation5 + $0xe0] sm:$0xff]  ;;  %v775_v60 = vmov 0.0  }
  0x36   :  { %601 = vmatpush3.bf16.msra.mxu0 %v600_v48  ;;  %v90_v3 = vld [vmem:[#allocation5 + $0x150] sm:$0xff]  ;;  %v91_v5 = vld [vmem:[#allocation5 + $0x158] sm:$0xff]  ;;  %v77_v7 = vld [vmem:[#allocation5 + $0xe8] sm:$0xff]  ;;  %v608_v10 = vpack.c.bf16 %v59_v2, %v58_v1 }
  0x37   :  { %603 = vmatprep.subr.bf16.mxu0 %v602_v52  ;;  %v108_v8 = vld [vmem:[#allocation5 + $0x1e0] sm:$0xff]  ;;  %v109_v9 = vld [vmem:[#allocation5 + $0x1e8] sm:$0xff]  ;;  %v42_v12 = vld [vmem:[#allocation2 + $0x8] sm:$0xff]  ;;  %v640_v13 = vpack.c.bf16 %v91_v5, %v90_v3  ;;  %v610_v14 = vpack.c.bf16 %v77_v7, %v76_v6 }
  0x38   :  { %633 = vmatpush3.bf16.msra.mxu1 %v632_v51  ;;  %v60_v11 = vld [vmem:[#allocation5 + $0x60] sm:$0xff]  ;;  %v61_v15 = vld [vmem:[#allocation5 + $0x68] sm:$0xff]  ;;  %v642_v18 = vpack.c.bf16 %v109_v9, %v108_v8  ;;  %v78_v19 = vld [vmem:[#allocation5 + $0xf0] sm:$0xff]  ;;  %221 = vmatprep.mubr.f32.mxu0 %v42_v12 }
  0x39   :  { %635 = vmatprep.subr.bf16.mxu1 %v634_v56  ;;  %v92_v16 = vld [vmem:[#allocation5 + $0x160] sm:$0xff]  ;;  %v93_v17 = vld [vmem:[#allocation5 + $0x168] sm:$0xff]  ;;  %v79_v20 = vld [vmem:[#allocation5 + $0xf8] sm:$0xff]  ;;  %v612_v24 = vpack.c.bf16 %v61_v15, %v60_v11 }
  0x3a   :  { %605 = vmatpush3.bf16.msra.mxu0 %v604_v62  ;;  %v44_v21 = vld [vmem:[#allocation2 + $0x18] sm:$0xff]  ;;  %v110_v22 = vld [vmem:[#allocation5 + $0x1f0] sm:$0xff]  ;;  %v111_v23 = vld [vmem:[#allocation5 + $0x1f8] sm:$0xff]  ;;  %v644_v25 = vpack.c.bf16 %v93_v17, %v92_v16  ;;  %v614_v26 = vpack.c.bf16 %v79_v20, %v78_v19 }
  0x3b   :  { %607 = vmatprep.subr.bf16.mxu0 %v606_v0  ;;  %291 = vmatprep.mubr.f32.mxu1 %v44_v21  ;;  %v62_v27 = vld [vmem:[#allocation5 + $0x70] sm:$0xff]  ;;  %v63_v28 = vld [vmem:[#allocation5 + $0x78] sm:$0xff]  ;;  %v646_v30 = vpack.c.bf16 %v111_v23, %v110_v22  ;;  %v128_v32 = vld [vmem:[#allocation5 + $0x280] sm:$0xff] }
  0x3c   :  { %637 = vmatpush3.bf16.msra.mxu1 %v636_v63  ;;  %v94_v29 = vld [vmem:[#allocation5 + $0x170] sm:$0xff]  ;;  %v95_v31 = vld [vmem:[#allocation5 + $0x178] sm:$0xff]  ;;  %v129_v33 = vld [vmem:[#allocation5 + $0x288] sm:$0xff]  ;;  %v616_v34 = vpack.c.bf16 %v63_v28, %v62_v27 }
  0x3d   :  { %639 = vmatprep.subr.bf16.mxu1 %v638_v4  ;;  %v648_v35 = vpack.c.bf16 %v95_v31, %v94_v29  ;;  %v650_v36 = vpack.c.bf16 %v129_v33, %v128_v32  ;;  %v112_v37 = vld [vmem:[#allocation5 + $0x200] sm:$0xff]  ;;  %v113_v38 = vld [vmem:[#allocation5 + $0x208] sm:$0xff]  ;;  %v130_v39 = vld [vmem:[#allocation5 + $0x290] sm:$0xff] }
  0x3e   :  { %609 = vmatpush3.bf16.msra.mxu0 %v608_v10  ;;  %v131_v40 = vld [vmem:[#allocation5 + $0x298] sm:$0xff]  ;;  %v41_v41 = vld [vmem:[#allocation2] sm:$0xff]  ;;  %v652_v42 = vpack.c.bf16 %v113_v38, %v112_v37  ;;  %v114_v44 = vld [vmem:[#allocation5 + $0x210] sm:$0xff] }
  0x3f   :  { %611 = vmatprep.subr.bf16.mxu0 %v610_v14  ;;  %v43_v43 = vld [vmem:[#allocation2 + $0x10] sm:$0xff]  ;;  %v654_v45 = vpack.c.bf16 %v131_v40, %v130_v39  ;;  %v132_v47 = vld [vmem:[#allocation5 + $0x2a0] sm:$0xff]  ;;  %v133_v48 = vld [vmem:[#allocation5 + $0x2a8] sm:$0xff]  ;;  %v438_v39 = vlaneseq }
  0x40   :  { %641 = vmatpush3.bf16.msra.mxu1 %v640_v13  ;;  %v115_v46 = vld [vmem:[#allocation5 + $0x218] sm:$0xff]  ;;  %v46_v49 = vld [vmem:[#allocation2 + $0x28] sm:$0xff]  ;;  %v144_v51 = vld [vmem:[#allocation5 + $0x300] sm:$0xff]  ;;  %v658_v55 = vpack.c.bf16 %v133_v48, %v132_v47 }
  0x41   :  { %643 = vmatprep.subr.bf16.mxu1 %v642_v18  ;;  %v145_v52 = vld [vmem:[#allocation5 + $0x308] sm:$0xff]  ;;  %v656_v54 = vpack.c.bf16 %v115_v46, %v114_v44  ;;  %v116_v56 = vld [vmem:[#allocation5 + $0x220] sm:$0xff]  ;;  %v134_v58 = vld [vmem:[#allocation5 + $0x2b0] sm:$0xff] }
  0x42   :  { %613 = vmatpush3.bf16.msra.mxu0 %v612_v24  ;;  %v683_v53 = vpack.c.bf16 %v145_v52, %v144_v51  ;;  %v117_v57 = vld [vmem:[#allocation5 + $0x228] sm:$0xff]  ;;  %v135_v59 = vld [vmem:[#allocation5 + $0x2b8] sm:$0xff]  ;;  %v118_v0 = vld [vmem:[#allocation5 + $0x230] sm:$0xff] }
  0x43   :  { %615 = vmatprep.subr.bf16.mxu0 %v614_v26  ;;  %v47_v61 = vld [vmem:[#allocation2 + $0x30] sm:$0xff]  ;;  %v660_v62 = vpack.c.bf16 %v117_v57, %v116_v56  ;;  %v662_v63 = vpack.c.bf16 %v135_v59, %v134_v58  ;;  %v136_v2 = vld [vmem:[#allocation5 + $0x2c0] sm:$0xff]  ;;  %v137_v3 = vld [vmem:[#allocation5 + $0x2c8] sm:$0xff] }
  0x44   :  { %645 = vmatpush3.bf16.msra.mxu1 %v644_v25  ;;  %v119_v1 = vld [vmem:[#allocation5 + $0x238] sm:$0xff]  ;;  %v666_v5 = vpack.c.bf16 %v137_v3, %v136_v2  ;;  %v120_v6 = vld [vmem:[#allocation5 + $0x240] sm:$0xff]  ;;  %v121_v7 = vld [vmem:[#allocation5 + $0x248] sm:$0xff] }
  0x45   :  { %647 = vmatprep.subr.bf16.mxu1 %v646_v30  ;;  %v664_v4 = vpack.c.bf16 %v119_v1, %v118_v0  ;;  %v138_v8 = vld [vmem:[#allocation5 + $0x2d0] sm:$0xff]  ;;  %v139_v9 = vld [vmem:[#allocation5 + $0x2d8] sm:$0xff]  ;;  %v668_v10 = vpack.c.bf16 %v121_v7, %v120_v6  ;;  %v140_v14 = vld [vmem:[#allocation5 + $0x2e0] sm:$0xff] }
  0x46   :  { %617 = vmatpush3.bf16.msra.mxu0 %v616_v34  ;;  %v670_v11 = vpack.c.bf16 %v139_v9, %v138_v8  ;;  %v122_v12 = vld [vmem:[#allocation5 + $0x250] sm:$0xff]  ;;  %v123_v13 = vld [vmem:[#allocation5 + $0x258] sm:$0xff]  ;;  %v141_v15 = vld [vmem:[#allocation5 + $0x2e8] sm:$0xff] }
  0x47   :  { %651 = vmatprep.subr.bf16.mxu0 %v650_v36  ;;  %v672_v16 = vpack.c.bf16 %v123_v13, %v122_v12  ;;  %v674_v17 = vpack.c.bf16 %v141_v15, %v140_v14  ;;  %v124_v18 = vld [vmem:[#allocation5 + $0x260] sm:$0xff]  ;;  %v125_v19 = vld [vmem:[#allocation5 + $0x268] sm:$0xff]  ;;  %v142_v20 = vld [vmem:[#allocation5 + $0x2f0] sm:$0xff] }
  0x48   :  { %649 = vmatpush3.bf16.msra.mxu1 %v648_v35  ;;  %v143_v21 = vld [vmem:[#allocation5 + $0x2f8] sm:$0xff]  ;;  %v676_v22 = vpack.c.bf16 %v125_v19, %v124_v18  ;;  %v126_v24 = vld [vmem:[#allocation5 + $0x270] sm:$0xff]  ;;  %v45_v27 = vld [vmem:[#allocation2 + $0x20] sm:$0xff] }
  0x49   :  { %682 = vmatprep.subr.bf16.mxu1 %v773_v50  ;;  %222 = vmatmul.mubr.f32.vlgmr.msra.gmra.mrb[0].mxu0 %v41_v41  ;;  %v678_v23 = vpack.c.bf16 %v143_v21, %v142_v20  ;;  %v127_v25 = vld [vmem:[#allocation5 + $0x278] sm:$0xff]  ;;  %v469_v29 = vld [vmem:[%s845_s2] ss:$0 sm:$0xff]  ;;  %s776_s2 = smov [#allocation7]  }
  0x4a   :  { %653 = vmatpush3.bf16.msra.mxu0 %v652_v42  ;;  %361 = vmatprep.mubr.f32.mxu0 %v46_v49  ;;  %v680_v26 = vpack.c.bf16 %v127_v25, %v126_v24  ;;  %s459_s11 = sshll.u32 %s776_s2, 4  ;;  %s460_s11 = int_to_ptr.vmem [resolvable:$true] %s459_s11 }
  0x4b   :  { %292 = vmatmul.mubr.f32.vlgmr.msra.gmra.mrb[0].mxu1 %v43_v43  ;;  %655 = vmatprep.subr.bf16.mxu0 %v654_v45  ;;  %v439_v43 = vand.u32 127, %v438_v39  ;;  %s741_s12 = scalar_lea.vmem %s460_s11, 128  ;;  %p746_p3 = scmp.lt.s32.totalorder %s460_s11, %s460_s11 }
  0x4c   :  { %684 = vmatpush3.bf16.msra.mxu1 %v683_v53  ;;  %583 = vmatprep.mubr.msk.f32.mxu1 %vm774_vm0, %v775_v60  ;;  %p742_p2 = scmp.ne.s32.totalorder %s460_s11, %s741_s12  ;;  %p747_p4 = scmp.lt.s32.totalorder %s741_s12, %s741_s12 }
  0x4d   :  { %vm440_vm2 = vcmp.lt.s32.totalorder %v439_v43, 10 }
  0x4e   :  { %657 = vmatpush3.bf16.msra.mxu0 %v656_v54  ;;  %p748_p5 = por %p747_p4, %p746_p3 }
  0x4f   :  { %659 = vmatprep.subr.bf16.mxu0 %v658_v55  ;;  %584 = vmatmul.mubr.msk.f32.vlgmr.msra.gmra.mrb[2].mxu1 %vm153_vm1, %v47_v61 }
  0x50   :  { %p749_p6 = pnand %p748_p5, %p742_p2 }
  0x52   :  { %661 = vmatpush3.bf16.msra.mxu0 %v660_v62 }
  0x53   :  { %663 = vmatprep.subr.bf16.mxu0 %v662_v63 }
  0x56   :  { %665 = vmatpush3.bf16.msra.mxu0 %v664_v4 }
  0x57   :  { %667 = vmatprep.subr.bf16.mxu0 %v666_v5 }
  0x5a   :  { %669 = vmatpush3.bf16.msra.mxu0 %v668_v10 }
  0x5b   :  { %671 = vmatprep.subr.bf16.mxu0 %v670_v11 }
  0x5e   :  { %673 = vmatpush3.bf16.msra.mxu0 %v672_v16 }
  0x5f   :  { %675 = vmatprep.subr.bf16.mxu0 %v674_v17 }
  0x62   :  { %677 = vmatpush3.bf16.msra.mxu0 %v676_v22 }
  0x63   :  { %679 = vmatprep.subr.bf16.mxu0 %v678_v23 }
  0x66   :  { %681 = vmatpush3.bf16.msra.mxu0 %v680_v26 }
  0x69   :  { %362 = vmatmul.mubr.f32.vlgmr.msra.gmra.mrb[2].mxu0 %v45_v27 }
 0x11c   :  { %v503_v28 = vpop.f32.mrb[0].mxu0 }
 0x11d   :  { %v504_v30 = vpop.f32.mrb[1].mxu0 }
 0x11e   :  { %v538_v31 = vpop.f32.mrb[0].mxu1  ;;  %v505_v32 = vadd.f32 %v504_v30, %v503_v28 }
 0x11f   :  { %v539_v33 = vpop.f32.mrb[1].mxu1 }
 0x120   :  { %v540_v34 = vadd.f32 %v539_v33, %v538_v31  ;;  %v224_v35 = vadd.f32 %v505_v32, %v469_v29 }
 0x122   :  { %v294_v36 = vadd.f32 %v540_v34, %v224_v35  ;;  %v433_v37 = vpop.f32.mrb[2].mxu1 }
 0x123   :  { %v585_v38 = vpop.f32.mrb[3].mxu1 }
 0x13c   :  { %v573_v40 = vpop.f32.mrb[2].mxu0 }
 0x13d   :  { %v574_v41 = vpop.f32.mrb[3].mxu0 }
 0x13e   :  { %v575_v42 = vadd.f32 %v574_v41, %v573_v40 }
 0x140   :  { %v364_v44 = vadd.f32 %v575_v42, %v294_v36 }
 0x142   :  { %v434_v45 = vadd.f32 %v433_v37, %v364_v44 }
 0x144   :  { %v437_v46 = vmax.f32 %v434_v45, 0.0 }
 0x146   :  { %v441_v47 = vsel %vm440_vm2, %v437_v46, -inf }
 0x147   :  { %442 = vmax.xlane.f32.xlu0 %v441_v47 }
 0x1d4   :  { %v443_v48 = vpop.xlane.xlu0 %442 }
 0x1d5   :  { %v444_v49 = vsub.f32 %v441_v47, %v443_v48 }
 0x1d7   :  { %v445_v50 = vmul.f32 1.442695, %v444_v49 }
 0x1d9   :  { %693 = vpow2.f32 %v445_v50 }
 0x1e3   :  { %v694_v51 = vpop.eup %693 }
 0x1e4   :  { %447 = vadd.xlane.f32.xlu0 %v694_v51 }
 0x271   :  { %v448_v52 = vpop.xlane.xlu0 %447 }
 0x272   :  { %695 = vlog2.f32 %v448_v52 }
 0x27c   :  { %v696_v53 = vpop.eup %695 }
 0x27d   :  { %v450_v54 = vmul.f32 0.6931472, %v696_v53 }
 0x27f   :  { %v451_v55 = vsub.f32 %v444_v49, %v450_v54 }
 0x281   :  { %452 = vst [vmem:[#allocation7] sm:$0xff] %v451_v55 }
 0x282   :  { %752 = shalt.err (!%p749_p6)
}
 0x283   :  { %s753_s15 = scalar_lea.hbm %s846_s3, 128 }
 0x284   :  { %p754_p7 = scmp.ne.s32.totalorder %s846_s3, %s753_s15  ;;  %p757_p8 = scmp.lt.u32.totalorder %s753_s15, %s846_s3 }
 0x286   :  { %p759_p9 = pnand %p757_p8, %p754_p7 }
 0x288   :  { %762 = shalt.err (!%p759_p9)
}
 0x289   :  { %462 = dma.vmem_to_hbm [thread:$0]  %s460_s11, 128, %s846_s3, [#allocation4]  }
 0x28a   :  { %767 = dma.done.wait [#allocation4], 128  }
 0x28b   :  { %768 = vsyncadd [#allocation4], 4294967168 }
 0x28c   :  { %466 = vsyncpa [#allocation3], 1 }
 0x28d   :  { %467 = vsyncpa [#allocation6], 1 }
 0x28e   :  { %468 = vsyncpa [#allocation4], 1 }

</bundles_post_ra>
